<compile_context>
chip_gen: v6e
topology: v6e:2x2x1
jax: 0.10.0
libtpu: 0.0.40
codegen_flags: <defaults>
</compile_context>

<pallas_src>
import math

import jax
import jax.numpy as jnp
from jax import lax
from jax.experimental import pallas as pl
from jax.experimental.pallas import tpu as pltpu

_INV_SQRT2 = 1.0 / math.sqrt(2.0)
_LOG_2PI = math.log(2.0 * math.pi)
_PROB_CLAMP = 1e-6
_LOG2_E = math.log2(math.e)


def _round_up(x, m):
    return ((x + m - 1) // m) * m


def _softplus(t):
    # numerically-stable softplus written with ops that lower cleanly in Mosaic
    return jnp.maximum(t, 0.0) + jnp.log(1.0 + jnp.exp(-jnp.abs(t)))


def _pick_lane_tile(hw, max_tl, min_tiles):
    """Largest multiple-of-128 lane tile <= max_tl. Prefer exact divisors of hw
    (no pad / slice HBM round trips) and keep at least `min_tiles` tiles."""
    hw_ceil = _round_up(hw, 128)
    cap = max(128, min((max_tl // 128) * 128, hw_ceil))
    if hw % 128 == 0:
        for t in range(cap, 127, -128):
            if hw % t == 0 and hw // t >= min_tiles:
                return t, hw                       # no padding needed
    return cap, _round_up(hw, cap)                 # padded tail, masked in-kernel


def _make_prior_block_kernel(zdim, hw, tl, masked_tail):
    def kernel(x_ref, z_ref, w_prior_ref, b_prior_ref, w_zp_ref, b_zp_ref,
               feat_ref, klsum_ref):
        x_bf = x_ref[0]                    # (width, TL) bf16 -- MXU-native operand
        z = z_ref[0]                       # (zdim,  TL) f32

        # --- fused "prior" 1x1 conv: bf16 x bf16 -> f32 accumulate -----------
        p = jnp.dot(w_prior_ref[...], x_bf, preferred_element_type=jnp.float32)
        p = p + b_prior_ref[...]           # (2*zdim, 1) broadcast over lanes
        pm = p[:zdim, :]                   # chunk along output channels
        plogv = _softplus(p[zdim:, :] + 2.3) - 2.3
        inv_s = jnp.exp(-plogv)            # == 1 / exp(plogv)

        # --- gaussian_log_prob_mass(pm, exp(plogv), x=z, bin=1, clamp=1e-6) --
        c = z - pm
        a = c * (inv_s * _INV_SQRT2)       # CSE'd erf argument, reused in log_pdf
        d = (0.5 * _INV_SQRT2) * inv_s
        p_mass = 0.5 * (lax.erf(a + d) - lax.erf(a - d))
        log_pdf = -(a * a) - plogv - 0.5 * _LOG_2PI   # -(a*a) == -0.5*(c*inv_s)^2
        log_prob = jnp.where(p_mass > _PROB_CLAMP,
                             jnp.log(jnp.maximum(p_mass, _PROB_CLAMP)),
                             log_pdf)      # + log(bin_size) == 0 for bin_size=1
        kl = -log_prob
        if masked_tail:
            lane = lax.broadcasted_iota(jnp.int32, kl.shape, 1)
            valid = (pl.program_id(1) * tl + lane) < hw
            kl = jnp.where(valid, kl, 0.0)
        # Per-tile partial sum (lanes reduced, zdim sublanes kept): forward()
        # only needs sum(kl) for the bpp rate term.
        klsum_ref[0, 0] = jnp.sum(kl, axis=-1, keepdims=True)     # (zdim, 1)

        # --- "z_proj" 1x1 conv + residual ------------------------------------
        zproj = jnp.dot(w_zp_ref[...], z.astype(jnp.bfloat16),
                        preferred_element_type=jnp.float32)
        feat_ref[0] = (x_bf.astype(jnp.float32) + zproj + b_zp_ref[...]
                       ).astype(feat_ref.dtype)
    return kernel


def prior_block_forward(feature_nchw, qm_nchw, noise_nchw, params, *,
                        tile_hw=8192, vmem_budget_bytes=24 << 20):
    """feature: (N, width, H, W) (bf16 preferred); qm/noise: (N, zdim, H, W) f32.

    Returns (feature_out NCHW bf16, z NCHW f32, kl_sum (N,) f32).
    """
    n, width, h, w = feature_nchw.shape
    zdim = qm_nchw.shape[1]
    hw = h * w

    # channels-on-sublanes / pixels-on-lanes: NCHW -> (N, C, H*W) is free.
    x3 = feature_nchw.reshape(n, width, hw)
    if x3.dtype != jnp.bfloat16:
        # TODO(synk): emit bf16 from the producing block to make this cast free.
        x3 = x3.astype(jnp.bfloat16)

    # z = qm + U(-0.5, 0.5) computed here (fuses into the posterior's epilogue);
    # the kernel only ever needs the sum, and the caller keeps z (fdict['zs']),
    # so neither qm/noise inputs nor a z output stream through HBM.
    z3 = (qm_nchw.astype(jnp.float32)
          + noise_nchw.astype(jnp.float32)).reshape(n, zdim, hw)
    z_out = z3.reshape(n, zdim, h, w)

    # Generation-aware lane tile: as large as the VMEM budget allows
    # (double-buffered bf16 feature in/out + f32 z + f32 intermediates),
    # preferring a divisor of H*W so no pad/slice passes are needed.
    bytes_per_lane = 12 * width + 40 * zdim
    max_tl = min(int(tile_hw), max(128, vmem_budget_bytes // bytes_per_lane))
    min_tiles = 2 if n == 1 else 1      # keep >=2 parallel steps for v7x's 2 TCs
    tl, hw_p = _pick_lane_tile(hw, max_tl, min_tiles)

    x3_k, z3_k = x3, z3
    if hw_p != hw:
        pad = [(0, 0), (0, 0), (0, hw_p - hw)]
        x3_k = jnp.pad(x3, pad)
        z3_k = jnp.pad(z3, pad)

    w_prior, b_prior, w_zp, b_zp = params
    w_prior_bf = w_prior.astype(jnp.bfloat16)   # native bf16 MXU operands
    w_zp_bf = w_zp.astype(jnp.bfloat16)
    b_prior = b_prior.astype(jnp.float32)
    b_zp = b_zp.astype(jnp.float32)

    num_tiles = hw_p // tl
    grid = (n, num_tiles)
    kernel = _make_prior_block_kernel(zdim, hw, tl, masked_tail=(hw_p != hw))

    row3 = lambda c: pl.BlockSpec((1, c, tl), lambda b, j: (b, 0, j))
    full2 = lambda r, c: pl.BlockSpec((r, c), lambda b, j: (0, 0))

    feat3, klsums = pl.pallas_call(
        kernel,
        out_shape=(
            jax.ShapeDtypeStruct((n, width, hw_p), jnp.bfloat16),
            jax.ShapeDtypeStruct((n, num_tiles, zdim, 1), jnp.float32),
        ),
        grid_spec=pltpu.PrefetchScalarGridSpec(
            num_scalar_prefetch=0,
            grid=grid,
            in_specs=[
                row3(width),               # feature tile  (1, width, TL) bf16
                row3(zdim),                # z tile        (1, zdim,  TL) f32
                full2(2 * zdim, width),    # fused prior conv weight (bf16)
                full2(2 * zdim, 1),        # fused prior conv bias   (f32)
                full2(width, zdim),        # z_proj weight (bf16)
                full2(width, 1),           # z_proj bias   (f32)
            ],
            out_specs=[
                row3(width),                                          # feature out
                pl.BlockSpec((1, 1, zdim, 1), lambda b, j: (b, j, 0, 0)),  # kl sums
            ],
        ),
        compiler_params=pltpu.CompilerParams(
            dimension_semantics=("parallel", "parallel"),
            vmem_limit_bytes=40 << 20),
    )(x3_k, z3_k, w_prior_bf, b_prior, w_zp_bf, b_zp)

    if hw_p != hw:
        feat3 = feat3[:, :, :hw]
    feat_out = feat3.reshape(n, width, h, w)
    kl_sum = klsums.sum(axis=(1, 2, 3))        # (N,) -- rate term per image
    return feat_out, z_out, kl_sum


def init_params(key, width, zdim):
    """Stand-ins for the two 1x1 convs, stored as (C_out, C_in) like PyTorch."""
    k1, k2, k3, k4 = jax.random.split(key, 4)
    s_p = 1.0 / math.sqrt(width)
    s_z = 1.0 / math.sqrt(zdim)
    w_prior = jax.random.uniform(k1, (2 * zdim, width), jnp.float32, -s_p, s_p)
    b_prior = jax.random.uniform(k2, (2 * zdim, 1), jnp.float32, -s_p, s_p)
    # Bias the log-variance half up so the prior is not degenerately narrow
    # (keeps the test data away from the discontinuous prob_clamp branch).
    b_prior = b_prior.at[zdim:].add(1.5)
    w_zp = jax.random.uniform(k3, (width, zdim), jnp.float32, -s_z, s_z)
    b_zp = jax.random.uniform(k4, (width, 1), jnp.float32, -s_z, s_z)
    return (w_prior, b_prior, w_zp, b_zp)


def _reference(feature, qm, noise, params):
    """Pure-JAX reference of the same math (channels-first layout).
    Mirrors the kernel's bf16 MXU operands (weights, x, z) with f32 accum."""
    w_prior, b_prior, w_zp, b_zp = params
    n, width, h, w = feature.shape
    zdim = qm.shape[1]
    hw = h * w
    hp = lax.Precision.HIGHEST
    x = feature.reshape(n, width, hw).astype(jnp.float32)
    q = qm.reshape(n, zdim, hw).astype(jnp.float32)
    u = noise.reshape(n, zdim, hw).astype(jnp.float32)
    wp = w_prior.astype(jnp.bfloat16).astype(jnp.float32)
    wz = w_zp.astype(jnp.bfloat16).astype(jnp.float32)

    p = jnp.einsum("oc,ncm->nom", wp, x, precision=hp) + b_prior[None]
    pm = p[:, :zdim]
    plogv = _softplus(p[:, zdim:] + 2.3) - 2.3
    inv_s = jnp.exp(-plogv)
    z = q + u
    c = z - pm
    p_mass = 0.5 * (lax.erf((c + 0.5) * inv_s * _INV_SQRT2)
                    - lax.erf((c - 0.5) * inv_s * _INV_SQRT2))
    log_pdf = -0.5 * jnp.square(c * inv_s) - plogv - 0.5 * _LOG_2PI
    kl = -jnp.where(p_mass > _PROB_CLAMP,
                    jnp.log(jnp.maximum(p_mass, _PROB_CLAMP)), log_pdf)
    z_bf = z.astype(jnp.bfloat16).astype(jnp.float32)
    feat = x + jnp.einsum("oc,ncm->nom", wz, z_bf, precision=hp) + b_zp[None]
    return (feat.reshape(n, width, h, w),
            z.reshape(n, zdim, h, w),
            kl.sum(axis=(1, 2)))


if __name__ == "__main__":
    N, WIDTH, ZDIM, H, W = 2, 32, 8, 32, 32   # H*W = 1024 -> one 1024-lane tile

    key = jax.random.PRNGKey(0)
    k_feat, k_qm, k_noise, k_params = jax.random.split(key, 4)

    # Producer-layer feature is assumed bf16 (dominant HBM stream).
    feature = jax.random.normal(k_feat, (N, WIDTH, H, W),
                                jnp.float32).astype(jnp.bfloat16)
    qm = jax.random.normal(k_qm, (N, ZDIM, H, W), jnp.float32)
    # torch.empty_like(qm).uniform_(-0.5, 0.5) equivalent (fixed seed)
    noise = jax.random.uniform(k_noise, (N, ZDIM, H, W), jnp.float32, -0.5, 0.5)
    params = init_params(k_params, WIDTH, ZDIM)

    feat_out, z_out, kl_sum = prior_block_forward(feature, qm, noise, params)
    jax.block_until_ready((feat_out, z_out, kl_sum))

    # Rate term of VariableRateLossyVAE.forward: bpp = sum(kl) * log2(e) / (H*W)
    bpp = kl_sum * _LOG2_E / float(H * W)
    jax.block_until_ready(bpp)

    ref_feat, ref_z, ref_kl_sum = _reference(feature, qm, noise, params)

    # z = qm + noise is exact f32 in both paths.
    assert jnp.allclose(z_out, ref_z, atol=1e-5, rtol=1e-5)

    # Feature output is bf16: compare against the bf16-rounded f32 reference.
    ref_feat_bf16 = ref_feat.astype(jnp.bfloat16).astype(jnp.float32)
    assert jnp.allclose(feat_out.astype(jnp.float32), ref_feat_bf16,
                        atol=5e-2, rtol=5e-2)

    # kl rate term: per-image sums (what forward() actually consumes). The init
    # keeps p_mass far above the 1e-6 clamp, so Mosaic-vs-XLA erf polynomial
    # differences stay tiny and wash out in the sum.
    assert jnp.allclose(kl_sum, ref_kl_sum, rtol=5e-3, atol=1.0), (kl_sum, ref_kl_sum)

    print("KERNEL_OK")
</pallas_src>

<mosaic_0001>
module attributes {stable_mosaic.version = 11 : i64} {
  func.func @kernel(%arg0: i32, %arg1: i32, %arg2: memref<1x32x1024xbf16, #tpu.memory_space<vmem>>, %arg3: memref<1x8x1024xf32, #tpu.memory_space<vmem>>, %arg4: memref<16x32xbf16, #tpu.memory_space<vmem>>, %arg5: memref<16x1xf32, #tpu.memory_space<vmem>>, %arg6: memref<32x8xbf16, #tpu.memory_space<vmem>>, %arg7: memref<32x1xf32, #tpu.memory_space<vmem>>, %arg8: memref<1x32x1024xbf16, #tpu.memory_space<vmem>>, %arg9: memref<1x1x8x1xf32, #tpu.memory_space<vmem>>) attributes {dimension_semantics = [#tpu.dimension_semantics<parallel>, #tpu.dimension_semantics<parallel>], iteration_bounds = array<i64: 2, 1>, scalar_prefetch = 0 : i64, scratch_operands = 0 : i64, tpu.core_type = #tpu.core_type<tc>, window_params = [{transform_indices = @transform_0, window_bounds = array<i64: 1, 32, 1024>}, {transform_indices = @transform_1, window_bounds = array<i64: 1, 8, 1024>}, {pipeline_mode = #tpu.pipeline_mode<synchronous>, transform_indices = @transform_2, window_bounds = array<i64: 16, 32>}, {pipeline_mode = #tpu.pipeline_mode<synchronous>, transform_indices = @transform_3, window_bounds = array<i64: 16, 1>}, {pipeline_mode = #tpu.pipeline_mode<synchronous>, transform_indices = @transform_4, window_bounds = array<i64: 32, 8>}, {pipeline_mode = #tpu.pipeline_mode<synchronous>, transform_indices = @transform_5, window_bounds = array<i64: 32, 1>}, {transform_indices = @transform_6, window_bounds = array<i64: 1, 32, 1024>}, {transform_indices = @transform_7, window_bounds = array<i64: 1, 1, 8, 1>}]} {
    %c0 = arith.constant 0 : index
    %c0_0 = arith.constant 0 : index
    %c0_1 = arith.constant 0 : index
    %0 = vector.load %arg2[%c0, %c0_0, %c0_1] : memref<1x32x1024xbf16, #tpu.memory_space<vmem>>, vector<1x32x1024xbf16>
    %1 = vector.shape_cast %0 : vector<1x32x1024xbf16> to vector<32x1024xbf16>
    %c0_2 = arith.constant 0 : index
    %c0_3 = arith.constant 0 : index
    %c0_4 = arith.constant 0 : index
    %2 = vector.load %arg3[%c0_2, %c0_3, %c0_4] : memref<1x8x1024xf32, #tpu.memory_space<vmem>>, vector<1x8x1024xf32>
    %3 = vector.shape_cast %2 : vector<1x8x1024xf32> to vector<8x1024xf32>
    %c0_5 = arith.constant 0 : index
    %c0_6 = arith.constant 0 : index
    %4 = vector.load %arg4[%c0_5, %c0_6] : memref<16x32xbf16, #tpu.memory_space<vmem>>, vector<16x32xbf16>
    %cst = arith.constant dense<0.000000e+00> : vector<16x1024xf32>
    %5 = tpu.matmul %4, %1, %cst {dimension_numbers = #tpu.dot_dimension_numbers<[1], [0], [0], [1], [0, 0, 1, 1], [], []>} : vector<16x32xbf16>, vector<32x1024xbf16>, vector<16x1024xf32> -> vector<16x1024xf32>
    %c0_7 = arith.constant 0 : index
    %c0_8 = arith.constant 0 : index
    %6 = vector.load %arg5[%c0_7, %c0_8] : memref<16x1xf32, #tpu.memory_space<vmem>>, vector<16x1xf32>
    %7 = vector.broadcast %6 : vector<16x1xf32> to vector<16x1024xf32>
    %8 = arith.addf %5, %7 : vector<16x1024xf32>
    %9 = vector.extract_strided_slice %8 {offsets = [0, 0], sizes = [8, 1024], strides = [1, 1]} : vector<16x1024xf32> to vector<8x1024xf32>
    %10 = vector.extract_strided_slice %8 {offsets = [8, 0], sizes = [8, 1024], strides = [1, 1]} : vector<16x1024xf32> to vector<8x1024xf32>
    %cst_9 = arith.constant 2.300000e+00 : f32
    %11 = vector.broadcast %cst_9 : f32 to vector<8x1024xf32>
    %12 = arith.addf %10, %11 : vector<8x1024xf32>
    %cst_10 = arith.constant 0.000000e+00 : f32
    %13 = vector.broadcast %cst_10 : f32 to vector<8x1024xf32>
    %14 = arith.maximumf %12, %13 : vector<8x1024xf32>
    %15 = math.absf %12 : vector<8x1024xf32>
    %cst_11 = arith.constant 0.000000e+00 : f32
    %16 = vector.broadcast %cst_11 : f32 to vector<8x1024xf32>
    %17 = arith.subf %16, %15 : vector<8x1024xf32>
    %18 = math.exp %17 : vector<8x1024xf32>
    %cst_12 = arith.constant 1.000000e+00 : f32
    %19 = vector.broadcast %cst_12 : f32 to vector<8x1024xf32>
    %20 = arith.addf %19, %18 : vector<8x1024xf32>
    %21 = math.log %20 : vector<8x1024xf32>
    %22 = arith.addf %14, %21 : vector<8x1024xf32>
    %cst_13 = arith.constant 2.300000e+00 : f32
    %23 = vector.broadcast %cst_13 : f32 to vector<8x1024xf32>
    %24 = arith.subf %22, %23 : vector<8x1024xf32>
    %cst_14 = arith.constant 0.000000e+00 : f32
    %25 = vector.broadcast %cst_14 : f32 to vector<8x1024xf32>
    %26 = arith.subf %25, %24 : vector<8x1024xf32>
    %27 = math.exp %26 : vector<8x1024xf32>
    %28 = arith.subf %3, %9 : vector<8x1024xf32>
    %cst_15 = arith.constant 0.707106769 : f32
    %29 = vector.broadcast %cst_15 : f32 to vector<8x1024xf32>
    %30 = arith.mulf %27, %29 : vector<8x1024xf32>
    %31 = arith.mulf %28, %30 : vector<8x1024xf32>
    %cst_16 = arith.constant 0.353553385 : f32
    %32 = vector.broadcast %cst_16 : f32 to vector<8x1024xf32>
    %33 = arith.mulf %32, %27 : vector<8x1024xf32>
    %34 = arith.addf %31, %33 : vector<8x1024xf32>
    %35 = math.erf %34 : vector<8x1024xf32>
    %36 = arith.subf %31, %33 : vector<8x1024xf32>
    %37 = math.erf %36 : vector<8x1024xf32>
    %38 = arith.subf %35, %37 : vector<8x1024xf32>
    %cst_17 = arith.constant 5.000000e-01 : f32
    %39 = vector.broadcast %cst_17 : f32 to vector<8x1024xf32>
    %40 = arith.mulf %39, %38 : vector<8x1024xf32>
    %41 = arith.mulf %31, %31 : vector<8x1024xf32>
    %cst_18 = arith.constant 0.000000e+00 : f32
    %42 = vector.broadcast %cst_18 : f32 to vector<8x1024xf32>
    %43 = arith.subf %42, %41 : vector<8x1024xf32>
    %44 = arith.subf %43, %24 : vector<8x1024xf32>
    %cst_19 = arith.constant 0.918938517 : f32
    %45 = vector.broadcast %cst_19 : f32 to vector<8x1024xf32>
    %46 = arith.subf %44, %45 : vector<8x1024xf32>
    %cst_20 = arith.constant 9.99999997E-7 : f32
    %47 = vector.broadcast %cst_20 : f32 to vector<8x1024xf32>
    %48 = arith.cmpf ogt, %40, %47 : vector<8x1024xf32>
    %cst_21 = arith.constant 9.99999997E-7 : f32
    %49 = vector.broadcast %cst_21 : f32 to vector<8x1024xf32>
    %50 = arith.maximumf %40, %49 : vector<8x1024xf32>
    %51 = math.log %50 : vector<8x1024xf32>
    %52 = arith.select %48, %51, %46 : vector<8x1024xi1>, vector<8x1024xf32>
    %cst_22 = arith.constant 0.000000e+00 : f32
    %53 = vector.broadcast %cst_22 : f32 to vector<8x1024xf32>
    %54 = arith.subf %53, %52 : vector<8x1024xf32>
    %cst_23 = arith.constant dense<0.000000e+00> : vector<8xf32>
    %55 = vector.multi_reduction <add>, %54, %cst_23 [1] : vector<8x1024xf32> to vector<8xf32>
    %56 = vector.shape_cast %55 : vector<8xf32> to vector<8x1xf32>
    %c0_24 = arith.constant 0 : index
    %c0_25 = arith.constant 0 : index
    %c0_26 = arith.constant 0 : index
    %c0_27 = arith.constant 0 : index
    %57 = vector.load %arg9[%c0_24, %c0_25, %c0_26, %c0_27] : memref<1x1x8x1xf32, #tpu.memory_space<vmem>>, vector<1x1x8x1xf32>
    %58 = vector.shape_cast %57 : vector<1x1x8x1xf32> to vector<8x1xf32>
    %59 = vector.shape_cast %56 : vector<8x1xf32> to vector<1x1x8x1xf32>
    tpu.vector_store %arg9[%c0_24, %c0_25, %c0_26, %c0_27], %59 {strides = array<i32>} : memref<1x1x8x1xf32, #tpu.memory_space<vmem>>, vector<1x1x8x1xf32>,
    %c0_28 = arith.constant 0 : index
    %c0_29 = arith.constant 0 : index
    %60 = vector.load %arg6[%c0_28, %c0_29] : memref<32x8xbf16, #tpu.memory_space<vmem>>, vector<32x8xbf16>
    %61 = arith.truncf %3 : vector<8x1024xf32> to vector<8x1024xbf16>
    %cst_30 = arith.constant dense<0.000000e+00> : vector<32x1024xf32>
    %62 = tpu.matmul %60, %61, %cst_30 {dimension_numbers = #tpu.dot_dimension_numbers<[1], [0], [0], [1], [0, 0, 1, 1], [], []>} : vector<32x8xbf16>, vector<8x1024xbf16>, vector<32x1024xf32> -> vector<32x1024xf32>
    %63 = arith.extf %1 : vector<32x1024xbf16> to vector<32x1024xf32>
    %64 = arith.addf %63, %62 : vector<32x1024xf32>
    %c0_31 = arith.constant 0 : index
    %c0_32 = arith.constant 0 : index
    %65 = vector.load %arg7[%c0_31, %c0_32] : memref<32x1xf32, #tpu.memory_space<vmem>>, vector<32x1xf32>
    %66 = vector.broadcast %65 : vector<32x1xf32> to vector<32x1024xf32>
    %67 = arith.addf %64, %66 : vector<32x1024xf32>
    %68 = arith.truncf %67 : vector<32x1024xf32> to vector<32x1024xbf16>
    %c0_33 = arith.constant 0 : index
    %c0_34 = arith.constant 0 : index
    %c0_35 = arith.constant 0 : index
    %69 = vector.load %arg8[%c0_33, %c0_34, %c0_35] : memref<1x32x1024xbf16, #tpu.memory_space<vmem>>, vector<1x32x1024xbf16>
    %70 = vector.shape_cast %69 : vector<1x32x1024xbf16> to vector<32x1024xbf16>
    %71 = vector.shape_cast %68 : vector<32x1024xbf16> to vector<1x32x1024xbf16>
    tpu.vector_store %arg8[%c0_33, %c0_34, %c0_35], %71 {strides = array<i32>} : memref<1x32x1024xbf16, #tpu.memory_space<vmem>>, vector<1x32x1024xbf16>,
    return
  }
  func.func @transform_0(%arg0: i32, %arg1: i32) -> (i32, i32, i32) {
    %c0_i32 = arith.constant 0 : i32
    %c0_i32_0 = arith.constant 0 : i32
    return %arg0, %c0_i32, %arg1 : i32, i32, i32
  }
  func.func @transform_1(%arg0: i32, %arg1: i32) -> (i32, i32, i32) {
    %c0_i32 = arith.constant 0 : i32
    %c0_i32_0 = arith.constant 0 : i32
    return %arg0, %c0_i32, %arg1 : i32, i32, i32
  }
  func.func @transform_2(%arg0: i32, %arg1: i32) -> (i32, i32) {
    %c0_i32 = arith.constant 0 : i32
    %c0_i32_0 = arith.constant 0 : i32
    %c0_i32_1 = arith.constant 0 : i32
    return %c0_i32, %c0_i32_0 : i32, i32
  }
  func.func @transform_3(%arg0: i32, %arg1: i32) -> (i32, i32) {
    %c0_i32 = arith.constant 0 : i32
    %c0_i32_0 = arith.constant 0 : i32
    %c0_i32_1 = arith.constant 0 : i32
    return %c0_i32, %c0_i32_0 : i32, i32
  }
  func.func @transform_4(%arg0: i32, %arg1: i32) -> (i32, i32) {
    %c0_i32 = arith.constant 0 : i32
    %c0_i32_0 = arith.constant 0 : i32
    %c0_i32_1 = arith.constant 0 : i32
    return %c0_i32, %c0_i32_0 : i32, i32
  }
  func.func @transform_5(%arg0: i32, %arg1: i32) -> (i32, i32) {
    %c0_i32 = arith.constant 0 : i32
    %c0_i32_0 = arith.constant 0 : i32
    %c0_i32_1 = arith.constant 0 : i32
    return %c0_i32, %c0_i32_0 : i32, i32
  }
  func.func @transform_6(%arg0: i32, %arg1: i32) -> (i32, i32, i32) {
    %c0_i32 = arith.constant 0 : i32
    %c0_i32_0 = arith.constant 0 : i32
    return %arg0, %c0_i32, %arg1 : i32, i32, i32
  }
  func.func @transform_7(%arg0: i32, %arg1: i32) -> (i32, i32, i32, i32) {
    %c0_i32 = arith.constant 0 : i32
    %c0_i32_0 = arith.constant 0 : i32
    %c0_i32_1 = arith.constant 0 : i32
    return %arg0, %arg1, %c0_i32, %c0_i32_0 : i32, i32, i32, i32
  }
}

</mosaic_0001>

<bundles_post_ra>
// kernel: tpu_custom_call.1
= control target key start
LH: loop header
LB: loop body
LE: loop exit
PB: predicated region body
PF: predicated region fallthrough
CT: control target
= control target key end

     0   :  { %s2744_s0 = inlined_call_operand.hbm [shape: bf16[2,32,1024], index: 0, kind: input, shape index: {}]   ;;  %s2745_s1 = inlined_call_operand.hbm [shape: f32[2,8,1024], index: 1, kind: input, shape index: {}]   ;;  %s2746_s2 = inlined_call_operand.vmem [shape: bf16[16,32], index: 2, kind: input, shape index: {}]   ;;  %s2747_s3 = inlined_call_operand.vmem [shape: f32[16,1], index: 3, kind: input, shape index: {}]   ;;  %s2748_s4 = inlined_call_operand.vmem [shape: bf16[32,8], index: 4, kind: input, shape index: {}]   ;;  %s2749_s5 = inlined_call_operand.vmem [shape: f32[32,1], index: 5, kind: input, shape index: {}]   ;;  %s2750_s6 = inlined_call_operand.hbm [shape: bf16[2,32,1024], index: 6, kind: output, shape index: {0}]   ;;  %s2751_s7 = inlined_call_operand.vmem [shape: f32[2,1,8,1], index: 7, kind: output, shape index: {1}]  }
   0x1   :  { %2755 = sst [smem:[#allocation18_spill]] %s2744_s0 }
   0x2   :  { %13 = vsyncpa [#allocation3], 0 }
   0x3   :  { %15 = vsyncpa [#allocation3 + $0x1], 0 }
   0x4   :  { %16 = vsyncpa [#allocation6], 0 }
   0x5   :  { %18 = vsyncpa [#allocation6 + $0x1], 0 }
   0x6   :  { %19 = vsyncpa [#allocation4], 0 }
   0x7   :  { %21 = vsyncpa [#allocation4 + $0x1], 0  ;;  %s2103_s24 = smov 0   ;;  %s2105_s25 = smov 0  }
   0x8   :  { %s2107_s26 = smov 0   ;;  %s2109_s27 = smov 0  }
   0x9   :  { %s2111_s28 = smov 0   ;;  %s2113_s29 = smov 0  }
   0xa LB: > { %2756 = sst [smem:[#allocation11_spill]] %s2041_s26  ;;  %s1630_s30 = sadd.s32 4294967295, %s2053_s29   ;;  %s2053_s29 = sphi %s2113_s29, %s27_s29   ;;  %s2049_s28 = sphi %s2111_s28, %s2780_s28   ;;  %s2045_s27 = sphi %s2109_s27, %s2779_s27   ;;  %s2041_s26 = sphi %s2107_s26, %s2775_s26   ;;  %s2037_s25 = sphi %s2105_s25, %s2778_s25   ;;  %s2033_s24 = sphi %s2103_s24, %s2777_s24  }
   0xb   : > { %s1631_s8 = sadd.s32 4294967294, %s2053_s29   ;;  %s39_s9 = sadd.s32 1, %s2049_s28 }
   0xc   : > { %s48_s10 = sadd.s32 1, %s2041_s26  ;;  %p41_p0 = scmp.ge.s32.totalorder %s39_s9, 2 }
   0xd   : > { %p55_p1 = scmp.ne.s32.totalorder %s2041_s26, %s2037_s25  ;;  %p56_p2 = scmp.eq.s32.totalorder %s2053_s29, 0 }
   0xe   : > { %p61_p3 = scmp.ne.s32.totalorder %s2037_s25, %s2033_s24  ;;  %s2782_s9 = smov (%p41_p0, %s39_s9), 0 }
   0xf   : > { %2757 = sst [smem:[#allocation12_spill]] %s2782_s9  ;;  %p2144_p4 = por %p56_p2, %p55_p1 }
  0x10   : > { %p62_p5 = scmp.eq.s32.totalorder %s1630_s30, 0  ;;  %s43_s12 = ssub.s32 %s2049_s28, %s2782_s9 }
  0x11   : > { %p199_p6 = scmp.eq.s32.totalorder %s1630_s30, 1  ;;  %p46_p7 = scmp.eq.s32.totalorder %s43_s12, 0 }
  0x12   : > { %p2150_p8 = por %p62_p5, %p61_p3  ;;  %p205_p10 = scmp.eq.s32.totalorder %s1631_s8, 1 }
  0x13   : > { %p2154_p9 = por %p199_p6, %p55_p1  ;;  %p1633_p12 = scmp.ge.s32.totalorder %s2053_s29, 2 }
  0x14   : > { %s2159_s15 = scalar_select %p46_p7, %s2041_s26, %s48_s10  }
  0x15   : > { %p2161_p11 = por %p205_p10, %p61_p3  ;;  %p1753_p13 = scmp.lt.s32.totalorder %s2053_s29, 2 }
  0x16   : > { %2761 = sst [smem:[#allocation13_spill]] %s2159_s15  ;;  %s2168_s17 = sand.u32 1, %s2041_s26  }
  0x17   : > { %s2762_s16 = scalar_select %p2161_p11, 1, 0 }
  0x18   : > { %s1634_s18 = sshll.u32 %s2168_s17, 7  ;;  %s1717_s19 = sshll.u32 %s2049_s28, 11 }
  0x19   : > { %2763 = sst [smem:[#allocation14_spill]] %s2762_s16  ;;  %s269_s23 = scalar_lea.vmem [#allocation2], %s1634_s18 }
  0x1a   : > { %s2764_s0 = sld [smem:[#allocation18_spill]]  ;;  %s278_s30 = sshll.u32 %s269_s23, 4  ;;  %s279_s30 = int_to_ptr.vmem [resolvable:$true] %s278_s30 }
  0x1b   : > { %p2177_p0 = pnand %p1753_p13, %p2144_p4  ;;  %p1640_p1 = scmp.ge.s32.totalorder %s2053_s29, 1 }
  0x1c   : > { %s266_s10 = scalar_lea.sflag [#allocation3], %s2168_s17  ;;  %s1926_s12 = scalar_lea.vmem %s279_s30, 2048 }
  0x1d   : > { %p1915_p2 = pneg %p2177_p0  ;;  %p1927_p3 = scmp.ne.s32.totalorder %s279_s30, %s1926_s12 }
  0x1e   : > { %s2055_s18 = smov [#allocation2]  }
  0x1f   : > { %p1929_p5 = pnand %p1927_p3, %p1915_p2 }
  0x20   : > { %s277_s22 = scalar_lea.hbm %s2764_s0, %s1717_s19  ;;  %s1931_s19 = sshll.u32 %s2055_s18, 4  ;;  %s1932_s19 = int_to_ptr.vmem [resolvable:$false] %s1931_s19 }
  0x21   : > { %p1930_p6 = pneg %p1929_p5  ;;  %s1933_s11 = scalar_lea.vmem %s1932_s19, 4096 }
  0x22   : > { %p1934_p4 = scmp.lt.s32.totalorder %s279_s30, %s1932_s19  ;;  %p1935_p7 = scmp.lt.s32.totalorder %s1933_s11, %s1926_s12 }
  0x24   : > { %p1936_p10 = por %p1935_p7, %p1934_p4 }
  0x26   : > { %p1937_p13 = pnand %p1936_p10, %p1930_p6 }
  0x28   : > { %1940 = shalt.err (!%p1937_p13)
}
  0x29   : > { %s2056_s20 = smov 512   ;;  %s2057_s21 = smov 32  }
  0x2a   : > { %1745 = dma.hbm_to_vmem [thread:$0]  (!%p2177_p0), %s277_s22, 2048, %s279_s30, %s266_s10, %s2056_s20, %s2056_s20, %s2057_s21  }
  0x2b   : > { %p307_p3 = scmp.lt.s32.totalorder %s2053_s29, 3  ;;  %s1637_s23 = sshll.u32 %s2168_s17, 6 }
  0x2c   : > { %s1718_s18 = sshll.u32 %s2049_s28, 10  ;;  %s292_s9 = scalar_lea.vmem [#allocation5], %s1637_s23 }
  0x2d   : > { %p2195_p5 = pnand %p1640_p1, %p307_p3  ;;  %s300_s0 = scalar_lea.hbm %s2745_s1, %s1718_s18 }
  0x2e   : > { %s302_s15 = sshll.u32 %s292_s9, 4  ;;  %s289_s26 = scalar_lea.sflag [#allocation6], %s2168_s17  ;;  %s303_s15 = int_to_ptr.vmem [resolvable:$true] %s302_s15 }
  0x2f   : > { %s1954_s16 = scalar_lea.vmem %s303_s15, 1024  ;;  %s2058_s22 = smov [#allocation5]  }
  0x30   : > { %p1955_p6 = scmp.ne.s32.totalorder %s303_s15, %s1954_s16  ;;  %s1959_s30 = sshll.u32 %s2058_s22, 4  ;;  %s1960_s30 = int_to_ptr.vmem [resolvable:$false] %s1959_s30 }
  0x31   : > { %s1961_s10 = scalar_lea.vmem %s1960_s30, 2048  ;;  %p1962_p1 = scmp.lt.s32.totalorder %s303_s15, %s1960_s30 }
  0x32   : > { %p1957_p4 = pnand %p1955_p6, %p1915_p2  ;;  %p1963_p10 = scmp.lt.s32.totalorder %s1961_s10, %s1954_s16 }
  0x34   : > { %p1958_p7 = pneg %p1957_p4  ;;  %p1964_p13 = por %p1963_p10, %p1962_p1 }
  0x36   : > { %p1965_p3 = pnand %p1964_p13, %p1958_p7 }
  0x38   : > { %1968 = shalt.err (!%p1965_p3)
}
  0x39   : > { %1748 = dma.hbm_to_vmem [thread:$0]  (!%p2177_p0), %s300_s0, 1024, %s303_s15, %s289_s26  }
  0x3a   : > { %311 = sbr.rel (%p2195_p5) target bundleno = 568 (0x238), region = 44 }
  0x3f   : > { %s2211_s9 = sand.u32 1, %s2037_s25  }
  0x40   : > { %s1641_s17 = sshll.u32 %s2211_s9, 7  ;;  %s314_s20 = scalar_lea.sflag [#allocation3], %s2211_s9 }
  0x41   : > { %s2217_s16 = scalar_lea.vmem [#allocation2], %s1641_s17 }
  0x42   : > { %2020 = dma.done.wait (%p2150_p8), %s314_s20, 2048  }
  0x43   : > { %2022 = vsyncadd (%p2150_p8), %s314_s20, 4294965248  ;;  %s1642_s0 = sshll.u32 %s2211_s9, 6  ;;  %s323_s26 = scalar_lea.sflag [#allocation6], %s2211_s9 }
  0x44   : > { %s2225_s15 = scalar_lea.vmem [#allocation5], %s1642_s0 }
  0x45   : > { %2024 = dma.done.wait (%p2150_p8), %s323_s26, 1024  }
  0x46   : > { %2026 = vsyncadd (%p2150_p8), %s323_s26, 4294966272  ;;  %v2059_v0 = vmov 0   ;;  %v2236_v1 = vld [vmem:[%s2217_s16 + $0x40] sm:$0xff]  ;;  %v2242_v3 = vld [vmem:[%s2217_s16 + $0x48] sm:$0xff]  ;;  %vm503_vm0 = vcmask 261120   ;;  %vm991_vm1 = vcmask 1043456  }
  0x47   : > { %539 = vmatprep.mubr.bf16.mxu0 %v2059_v0  ;;  %582 = vmatprep.mubr.bf16.mxu1 %v2059_v0  ;;  %v2239_v2 = vld [vmem:[%s2217_s16 + $0x60] sm:$0xff]  ;;  %v2247_v5 = vld [vmem:[%s2217_s16 + $0x68] sm:$0xff]  ;;  %v2266_v15 = vld [vmem:[%s2217_s16 + $0x50] sm:$0xff]  ;;  %vm984_vm2 = vcmask 64512   ;;  %s2467_s8 = scalar_lea.vmem [#allocation7], %s1641_s17  ;;  %p372_p8 = scmp.lt.s32.totalorder %s2045_s27, 1 }
  0x48   : > { %1808 = vset.pattern.permute.xlu0 %v2059_v0  ;;  %1809 = vset.pattern.permute.xlu1 %v2059_v0  ;;  %v1655_v4 = vcombine.high %v2236_v1, %v2239_v2  ;;  %v1654_v6 = vcombine.low %v2236_v1, %v2239_v2  ;;  %v380_v7 = vld [vmem:[%s2217_s16] sm:$0xff]  ;;  %v1657_v9 = vcombine.high %v2242_v3, %v2247_v5  ;;  %v381_v12 = vld [vmem:[%s2217_s16 + $0x8] sm:$0xff]  ;;  %v2270_v17 = vld [vmem:[%s2217_s16 + $0x70] sm:$0xff]  ;;  %vm960_vm11 = vcmask 7168   ;;  %s1483_s22 = sshll.u32 %s2467_s8, 4  ;;  %s1461_s20 = scalar_lea.sflag [#allocation4], %s2211_s9  ;;  %s2692_s22 = int_to_ptr.vmem [resolvable:$true] %s1483_s22 }
  0x49   : > { %v2253_v8 = vld [vmem:[%s2217_s16 + $0x20] sm:$0xff]  ;;  %v1656_v10 = vcombine.low %v2242_v3, %v2247_v5  ;;  %v2262_v13 = vld [vmem:[%s2217_s16 + $0x28] sm:$0xff]  ;;  %v2273_v18 = vld [vmem:[%s2217_s16 + $0x58] sm:$0xff]  ;;  %v1659_v21 = vcombine.high %v2266_v15, %v2270_v17  ;;  %v1658_v28 = vcombine.low %v2266_v15, %v2270_v17  ;;  %s373_s23 = scalar_select %p372_p8, %s2045_s27, 1 }
  0x4a   : > { %v1647_v11 = vcombine.high %v380_v7, %v2253_v8  ;;  %519 = vmatprep.subr.bf16.mxu0 %v1655_v4  ;;  %v1649_v14 = vcombine.high %v381_v12, %v2262_v13  ;;  %562 = vmatprep.subr.bf16.mxu1 %v1657_v9  ;;  %v1646_v16 = vcombine.low %v380_v7, %v2253_v8  ;;  %v2276_v19 = vld [vmem:[%s2217_s16 + $0x78] sm:$0xff]  ;;  %v1810_v22 = vld [vmem:[%s2746_s2] sm:$0xff]   ;;  %v382_v24 = vld [vmem:[%s2217_s16 + $0x10] sm:$0xff]  ;;  %s1969_s0 = scalar_lea.vmem %s2692_s22, 2048  ;;  %s2060_s26 = smov [#allocation7]  }
  0x4b   : > { %520 = vmatpush1.bf16.msra.mxu0 %v1654_v6  ;;  %563 = vmatpush1.bf16.msra.mxu1 %v1656_v10  ;;  %v1648_v20 = vcombine.low %v381_v12, %v2262_v13  ;;  %v1661_v23 = vcombine.high %v2273_v18, %v2276_v19  ;;  %v2288_v25 = vld [vmem:[%s2217_s16 + $0x30] sm:$0xff]  ;;  %v383_v26 = vld [vmem:[%s2217_s16 + $0x18] sm:$0xff]  ;;  %v1660_v29 = vcombine.low %v2273_v18, %v2276_v19  ;;  %v2301_v32 = vld [vmem:[%s2225_s15 + $0x8] sm:$0xff]  ;;  %s1644_s18 = sshll.u32 %s373_s23, 3  ;;  %p1970_p0 = scmp.ne.s32.totalorder %s2692_s22, %s1969_s0 }
  0x4c   : > { %521 = vmatprep.subr.bf16.mxu0 %v1647_v11  ;;  %564 = vmatprep.subr.bf16.mxu1 %v1649_v14  ;;  %v2292_v27 = vld [vmem:[%s2217_s16 + $0x38] sm:$0xff]  ;;  %v1651_v30 = vcombine.high %v382_v24, %v2288_v25  ;;  %v2304_v33 = vld [vmem:[%s2225_s15] sm:$0xff]  ;;  %v2311_v35 = vld [vmem:[%s2225_s15 + $0x10] sm:$0xff]  ;;  %v1650_v36 = vcombine.low %v382_v24, %v2288_v25  ;;  %v967_v39 = vpack.c.bf16 %v2301_v32, %v2301_v32  ;;  %s378_s11 = scalar_lea.vmem %s2751_s7, %s1644_s18 }
  0x4d   : > { %v1653_v31 = vcombine.high %v383_v26, %v2292_v27  ;;  %v2308_v34 = vld [vmem:[%s2225_s15 + $0x18] sm:$0xff]  ;;  %v407_v37 = vld [vmem:[%s2747_s3 + $0x8] sm:$0xff]  ;;  %v1652_v38 = vcombine.low %v383_v26, %v2292_v27  ;;  %v966_v40 = vpack.c.bf16 %v2304_v33, %v2304_v33  ;;  %v968_v42 = vpack.c.bf16 %v2311_v35, %v2311_v35  ;;  %v406_v45 = vld [vmem:[%s2747_s3] sm:$0xff]  ;;  %p1971_p2 = pnand %p1970_p0, %p2154_p9 }
  0x4e   : > { %v969_v41 = vpack.c.bf16 %v2308_v34, %v2308_v34  ;;  %v2330_v43 = vld [vmem:[%s2225_s15 + $0x28] sm:$0xff]  ;;  %415 = vperm.xlu0 %1808, %v407_v37   ;;  %v2333_v44 = vld [vmem:[%s2225_s15 + $0x38] sm:$0xff]  ;;  %v2348_v50 = vld [vmem:[%s2225_s15 + $0x20] sm:$0xff] }
  0x4f   : > { %522 = vmatpush1.bf16.msra.mxu0 %v1646_v16  ;;  %565 = vmatpush1.bf16.msra.mxu1 %v1648_v20  ;;  %v993_v46 = vsel %vm991_vm1, %v966_v40, 0  ;;  %v999_v47 = vsel %vm991_vm1, %v968_v42, 0  ;;  %v971_v48 = vpack.c.bf16 %v2330_v43, %v2330_v43  ;;  %v973_v49 = vpack.c.bf16 %v2333_v44, %v2333_v44  ;;  %v2352_v51 = vld [vmem:[%s2225_s15 + $0x30] sm:$0xff]  ;;  %v1293_v52 = vld [vmem:[%s2749_s5 + $0x8] sm:$0xff]  ;;  %v1811_v54 = vld [vmem:[%s2748_s4] sm:$0xff]   ;;  %p1972_p5 = pneg %p1971_p2  ;;  %s1973_s15 = sshll.u32 %s2060_s26, 4  ;;  %s1974_s15 = int_to_ptr.vmem [resolvable:$false] %s1973_s15 }
  0x50   : > { %605 = vmatprep.subr.bf16.mxu0 %v1659_v21  ;;  %648 = vmatprep.subr.bf16.mxu1 %v1661_v23  ;;  %v970_v53 = vpack.c.bf16 %v2348_v50, %v2348_v50  ;;  %v972_v55 = vpack.c.bf16 %v2352_v51, %v2352_v51  ;;  %v1294_v56 = vld [vmem:[%s2749_s5 + $0x10] sm:$0xff]  ;;  %v1295_v59 = vld [vmem:[%s2749_s5 + $0x18] sm:$0xff]  ;;  %v1812_v60 = vld [vmem:[%s2748_s4 + $0x8] sm:$0xff]   ;;  %s1975_s13 = scalar_lea.vmem %s1974_s15, 4096  ;;  %p1976_p6 = scmp.lt.s32.totalorder %s2692_s22, %s1974_s15 }
  0x51   : > { %p1977_p4 = scmp.lt.s32.totalorder %s1975_s13, %s1969_s0 }
  0x52   : > { %1662 = vmatmul.mubr.msk.bf16.vlgmr.msra.gmra.mxu0 %vm503_vm0, %v1810_v22  ;;  %1663 = vmatmul.mubr.msk.bf16.vlgmr.msra.gmra.mxu1 %vm503_vm0, %v1810_v22  ;;  %v1005_v57 = vsel %vm991_vm1, %v970_v53, 0  ;;  %v1011_v58 = vsel %vm991_vm1, %v972_v55, 0 }
  0x53   : > { %606 = vmatpush1.bf16.msra.mxu0 %v1658_v28  ;;  %649 = vmatpush1.bf16.msra.mxu1 %v1660_v29  ;;  %p1978_p7 = por %p1977_p4, %p1976_p6 }
  0x54   : > { %607 = vmatprep.subr.bf16.mxu0 %v1651_v30  ;;  %650 = vmatprep.subr.bf16.mxu1 %v1653_v31 }
  0x55   : > { %625 = vmatprep.mubr.bf16.mxu0 %v2059_v0  ;;  %668 = vmatprep.mubr.bf16.mxu1 %v2059_v0  ;;  %p1979_p1 = pnand %p1978_p7, %p1972_p5 }
  0x56   : > { %410 = vperm.xlu0 %1808, %v406_v45  }
  0x57   : > { %608 = vmatpush1.bf16.msra.mxu0 %v1650_v36  ;;  %651 = vmatpush1.bf16.msra.mxu1 %v1652_v38 }
  0x58   : > { %1684 = vmatprep.subr.msk.bf16.mxu0 %vm991_vm1, %v967_v39  ;;  %1687 = vmatprep.subr.msk.bf16.mxu1 %vm991_vm1, %v969_v41 }
  0x5a   : > { %1664 = vmatmul.mubr.msk.bf16.vlgmr.msra.gmra.mxu0 %vm503_vm0, %v1810_v22  ;;  %1665 = vmatmul.mubr.msk.bf16.vlgmr.msra.gmra.mxu1 %vm503_vm0, %v1810_v22 }
  0x5b   : > { %1031 = vmatpush1.bf16.msra.mxu0 %v993_v46  ;;  %1084 = vmatpush1.bf16.msra.mxu1 %v999_v47 }
  0x5c   : > { %1048 = vmatprep.mubr.bf16.mxu0 %v2059_v0  ;;  %1101 = vmatprep.mubr.bf16.mxu1 %v2059_v0 }
  0x5d   : > { %1690 = vmatprep.subr.msk.bf16.mxu0 %vm991_vm1, %v971_v48  ;;  %1693 = vmatprep.subr.msk.bf16.mxu1 %vm991_vm1, %v973_v49 }
  0x5e   : > { %1303 = vperm.xlu0 %1808, %v1293_v52  }
  0x62   : > { %1685 = vmatmul.mubr.msk.bf16.vlgmr.msra.gmra.mxu0 %vm984_vm2, %v1811_v54  ;;  %1308 = vperm.xlu0 %1808, %v1294_v56  }
  0x63   : > { %1688 = vmatmul.mubr.msk.bf16.vlgmr.msra.gmra.mxu1 %vm984_vm2, %v1811_v54  ;;  %1058 = vmatprep.mubr.bf16.mxu0 %v2059_v0 }
  0x64   : > { %1111 = vmatprep.mubr.bf16.mxu1 %v2059_v0  ;;  %1137 = vmatpush1.bf16.msra.mxu0 %v1005_v57 }
  0x65   : > { %1190 = vmatpush1.bf16.msra.mxu1 %v1011_v58 }
  0x66   : > { %1313 = vperm.xlu0 %1808, %v1295_v59  }
  0x6a   : > { %1686 = vmatmul.mubr.msk.bf16.gmra.mxu0 %vm984_vm2, %v1812_v60 }
  0x6b   : > { %1689 = vmatmul.mubr.msk.bf16.gmra.mxu1 %vm984_vm2, %v1812_v60  ;;  %1154 = vmatprep.mubr.bf16.mxu0 %v2059_v0 }
  0x6c   : > { %1207 = vmatprep.mubr.bf16.mxu1 %v2059_v0 }
  0x72   : > { %1691 = vmatmul.mubr.msk.bf16.vlgmr.msra.gmra.mxu0 %vm984_vm2, %v1811_v54 }
  0x73   : > { %1694 = vmatmul.mubr.msk.bf16.vlgmr.msra.gmra.mxu1 %vm984_vm2, %v1811_v54  ;;  %1164 = vmatprep.mubr.bf16.mxu0 %v2059_v0 }
  0x74   : > { %1217 = vmatprep.mubr.bf16.mxu1 %v2059_v0 }
  0x7a   : > { %1692 = vmatmul.mubr.msk.bf16.gmra.mxu0 %vm984_vm2, %v1812_v60 }
  0x7b   : > { %1695 = vmatmul.mubr.msk.bf16.gmra.mxu1 %vm984_vm2, %v1812_v60 }
  0xc9   : > { %v416_v4 = vpop.permute.xlu0 %415 }
  0xd1   : > { %v2407_v23 = vpop.permute.xlu0 %410 }
 0x112   : > { %v2393_v61 = vpop.f32.mrf.mxu0  ;;  %v2395_v62 = vpop.f32.mrf.mxu1 }
 0x114   : > { %v2397_v63 = vpop.f32.mrf.mxu0  ;;  %v2399_v6 = vpop.f32.mrf.mxu1 }
 0x116   : > { %v545_v7 = vpop.f32.mrf.mxu0  ;;  %v588_v10 = vpop.f32.mrf.mxu1 }
 0x117   : > { %v546_v9 = vadd.f32 %v545_v7, %v416_v4  ;;  %v589_v11 = vadd.f32 %v588_v10, %v416_v4 }
 0x118   : > { %v547_v12 = vpop.f32.mrf.mxu0  ;;  %v590_v16 = vpop.f32.mrf.mxu1 }
 0x119   : > { %v2401_v14 = vadd.f32 2.3, %v546_v9  ;;  %v548_v0 = vadd.f32 %v547_v12, %v416_v4  ;;  %v2403_v20 = vadd.f32 2.3, %v589_v11  ;;  %v591_v21 = vadd.f32 %v590_v16, %v416_v4 }
 0x11a   : > { %v2405_v22 = vpop.f32.mrf.mxu0  ;;  %v670_v28 = vpop.f32.mrf.mxu1  ;;  %v1236_v16 = vunpack.c.l.bf16 %v2253_v8 }
 0x11b   : > { %v695_v24 = vand.u32 2147483647, %v2401_v14  ;;  %v2410_v26 = vadd.f32 2.3, %v548_v0  ;;  %v697_v29 = vand.u32 2147483647, %v2403_v20  ;;  %v2416_v31 = vadd.f32 %v670_v28, %v2407_v23 }
 0x11c   : > { %v2413_v30 = vadd.f32 2.3, %v591_v21  ;;  %v2418_v36 = vpop.f32.mrf.mxu0  ;;  %v672_v39 = vpop.f32.mrf.mxu1  ;;  %v1238_v21 = vunpack.c.l.bf16 %v2262_v13 }
 0x11d   : > { %v703_v37 = vsub.f32 0.0, %v695_v24  ;;  %v696_v38 = vand.u32 2147483647, %v2410_v26  ;;  %v705_v40 = vsub.f32 0.0, %v697_v29  ;;  %v2423_v47 = vadd.f32 %v672_v39, %v2407_v23 }
 0x11e   : > { %v698_v41 = vand.u32 2147483647, %v2413_v30  ;;  %v631_v42 = vpop.f32.mrf.mxu0  ;;  %v674_v48 = vpop.f32.mrf.mxu1 }
 0x11f   : > { %v711_v45 = vmul.f32 1.442695, %v703_v37  ;;  %v704_v46 = vsub.f32 0.0, %v696_v38  ;;  %v715_v49 = vmul.f32 1.442695, %v705_v40  ;;  %v632_v53 = vadd.f32 %v631_v42, %v416_v4 }
 0x120   : > { %v706_v52 = vsub.f32 0.0, %v698_v41  ;;  %v675_v54 = vadd.f32 %v674_v48, %v416_v4  ;;  %v633_v55 = vpop.f32.mrf.mxu0  ;;  %v676_v57 = vpop.f32.mrf.mxu1  ;;  %v1239_v40 = vunpack.c.h.bf16 %v2262_v13  ;;  %v1244_v41 = vunpack.c.l.bf16 %v2236_v1 }
 0x121   : > { %1813 = vpow2.f32 %v711_v45  ;;  %v713_v56 = vmul.f32 1.442695, %v704_v46  ;;  %v2425_v59 = vadd.f32 2.3, %v632_v53  ;;  %v634_v9 = vadd.f32 %v633_v55, %v416_v4  ;;  %v2452_v53 = vpop.permute.xlu0 %1303 }
 0x122   : > { %1815 = vpow2.f32 %v715_v49  ;;  %v717_v58 = vmul.f32 1.442695, %v706_v52  ;;  %v2427_v60 = vadd.f32 2.3, %v675_v54  ;;  %v2429_v7 = vpop.f32.mrf.mxu0  ;;  %v677_v10 = vadd.f32 %v676_v57, %v416_v4 }
 0x123   : > { %1817 = vpow2.f32 %v713_v56  ;;  %v2431_v11 = vpop.f32.mrf.mxu1  ;;  %v699_v12 = vand.u32 2147483647, %v2425_v59  ;;  %v2439_v28 = vadd.f32 2.3, %v634_v9  ;;  %v1237_v4 = vunpack.c.h.bf16 %v2253_v8 }
 0x124   : > { %2767 = vst [vmem:[#allocation15_spill] sm:$0xff] %v2431_v11  ;;  %1819 = vpow2.f32 %v717_v58  ;;  %v2434_v0 = vpop.f32.mrf.mxu0  ;;  %v701_v24 = vand.u32 2147483647, %v2427_v60  ;;  %v2441_v29 = vadd.f32 2.3, %v677_v10  ;;  %v1246_v42 = vunpack.c.l.bf16 %v2242_v3 }
 0x125   : > { %2768 = vst [vmem:[#allocation16_spill] sm:$0xff] %v2434_v0  ;;  %v2443_v37 = vpop.f32.mrf.mxu1  ;;  %v707_v38 = vsub.f32 0.0, %v699_v12  ;;  %v700_v46 = vand.u32 2147483647, %v2439_v28  ;;  %v1245_v49 = vunpack.c.h.bf16 %v2236_v1  ;;  %v1247_v52 = vunpack.c.h.bf16 %v2242_v3 }
 0x126   : > { %2769 = vst [vmem:[#allocation17_spill] sm:$0xff] %v2443_v37  ;;  %v1054_v39 = vpop.f32.mrf.mxu0  ;;  %v709_v45 = vsub.f32 0.0, %v701_v24  ;;  %v702_v8 = vand.u32 2147483647, %v2441_v29  ;;  %v1252_v12 = vunpack.c.l.bf16 %v2239_v2  ;;  %v1254_v3 = vunpack.c.l.bf16 %v2247_v5 }
 0x127   : > { %v1107_v48 = vpop.f32.mrf.mxu1  ;;  %v719_v54 = vmul.f32 1.442695, %v707_v38  ;;  %v1268_v55 = vadd.f32 %v1236_v16, %v1054_v39  ;;  %v708_v58 = vsub.f32 0.0, %v700_v46 }
 0x128   : > { %v1270_v56 = vadd.f32 %v1238_v21, %v1107_v48  ;;  %v1056_v13 = vpop.f32.mrf.mxu0  ;;  %v723_v57 = vmul.f32 1.442695, %v709_v45  ;;  %v710_v24 = vsub.f32 0.0, %v702_v8 }
 0x129   : > { %v1269_v9 = vadd.f32 %v1237_v4, %v1056_v13  ;;  %v1109_v10 = vpop.f32.mrf.mxu1  ;;  %1821 = vpow2.f32 %v719_v54  ;;  %v1324_v1 = vadd.f32 %v2452_v53, %v1268_v55  ;;  %v721_v38 = vmul.f32 1.442695, %v708_v58 }
 0x12a   : > { %v1060_v37 = vpop.f32.mrf.mxu0  ;;  %1823 = vpow2.f32 %v723_v57  ;;  %v1271_v16 = vadd.f32 %v1239_v40, %v1109_v10  ;;  %v725_v39 = vmul.f32 1.442695, %v710_v24  ;;  %v1326_v45 = vadd.f32 %v2452_v53, %v1270_v56  ;;  %v2461_v57 = vpop.permute.xlu0 %1308 }
 0x12b   : > { %v1325_v0 = vadd.f32 %v2452_v53, %v1269_v9  ;;  %v1113_v21 = vpop.f32.mrf.mxu1  ;;  %v1276_v4 = vadd.f32 %v1244_v41, %v1060_v37  ;;  %1825 = vpow2.f32 %v721_v38  ;;  %v1253_v9 = vunpack.c.h.bf16 %v2239_v2 }
 0x12c   : > { %v1278_v46 = vadd.f32 %v1246_v42, %v1113_v21  ;;  %v1062_v48 = vpop.f32.mrf.mxu0  ;;  %v1327_v8 = vadd.f32 %v2452_v53, %v1271_v16  ;;  %1827 = vpow2.f32 %v725_v39  ;;  %v1255_v56 = vunpack.c.h.bf16 %v2247_v5 }
 0x12d   : > { %v1723_v54 = vpack.c.bf16 %v1325_v0, %v1324_v1  ;;  %v1277_v55 = vadd.f32 %v1245_v49, %v1062_v48  ;;  %v1115_v13 = vpop.f32.mrf.mxu1  ;;  %v1332_v42 = vadd.f32 %v2461_v57, %v1276_v4 }
 0x12e   : > { %v1814_v11 = vpop.eup %1813  ;;  %v1279_v58 = vadd.f32 %v1247_v52, %v1115_v13  ;;  %v1064_v40 = vpop.f32.mrf.mxu0  ;;  %v1724_v0 = vpack.c.bf16 %v1327_v8, %v1326_v45  ;;  %v1334_v2 = vadd.f32 %v2461_v57, %v1278_v46 }
 0x12f   : > { %v1816_v37 = vpop.eup %1815  ;;  %v727_v41 = vadd.f32 1.0, %v1814_v11  ;;  %1448 = vst [vmem:[%s2467_s8 + $0x20] sm:$0xff] %v1723_v54  ;;  %v1333_v49 = vadd.f32 %v2461_v57, %v1277_v55  ;;  %v1117_v10 = vpop.f32.mrf.mxu1  ;;  %v1284_v11 = vadd.f32 %v1252_v12, %v1064_v40  ;;  %v1240_v12 = vunpack.c.l.bf16 %v2288_v25 }
 0x130   : > { %v1818_v52 = vpop.eup %1817  ;;  %v729_v24 = vadd.f32 1.0, %v1816_v37  ;;  %v1335_v5 = vadd.f32 %v2461_v57, %v1279_v58  ;;  %v1066_v1 = vpop.f32.mrf.mxu0  ;;  %1449 = vst [vmem:[%s2467_s8 + $0x28] sm:$0xff] %v1724_v0  ;;  %v1286_v39 = vadd.f32 %v1254_v3, %v1117_v10  ;;  %v1242_v3 = vunpack.c.l.bf16 %v2292_v27 }
 0x131   : > { %v1820_v38 = vpop.eup %1819  ;;  %1829 = vlog2.f32 %v727_v41  ;;  %v728_v16 = vadd.f32 1.0, %v1818_v52  ;;  %v1727_v21 = vpack.c.bf16 %v1333_v49, %v1332_v42  ;;  %v1119_v45 = vpop.f32.mrf.mxu1  ;;  %v1285_v46 = vadd.f32 %v1253_v9, %v1066_v1 }
 0x132   : > { %1831 = vlog2.f32 %v729_v24  ;;  %v730_v4 = vadd.f32 1.0, %v1820_v38  ;;  %v1728_v48 = vpack.c.bf16 %v1335_v5, %v1334_v2  ;;  %v2475_v54 = vpop.f32.mrf.mxu0  ;;  %v1287_v8 = vadd.f32 %v1255_v56, %v1119_v45  ;;  %v2481_v13 = vpop.permute.xlu0 %1313 }
 0x133   : > { %1833 = vlog2.f32 %v728_v16  ;;  %1452 = vst [vmem:[%s2467_s8 + $0x40] sm:$0xff] %v1727_v21  ;;  %v2478_v55 = vpop.f32.mrf.mxu1  ;;  %v1241_v40 = vunpack.c.h.bf16 %v2288_v25  ;;  %v1340_v37 = vadd.f32 %v2481_v13, %v1284_v11  ;;  %v1342_v41 = vadd.f32 %v2481_v13, %v1286_v39 }
 0x134   : > { %1835 = vlog2.f32 %v730_v4  ;;  %1453 = vst [vmem:[%s2467_s8 + $0x48] sm:$0xff] %v1728_v48  ;;  %v2484_v58 = vpop.f32.mrf.mxu0  ;;  %v1341_v9 = vadd.f32 %v2481_v13, %v1285_v46  ;;  %v1343_v56 = vadd.f32 %v2481_v13, %v1287_v8  ;;  %v1243_v49 = vunpack.c.h.bf16 %v2292_v27 }
 0x135   : > { %v2492_v0 = vpop.f32.mrf.mxu1  ;;  %v1248_v10 = vunpack.c.l.bf16 %v2266_v15  ;;  %v1250_v52 = vunpack.c.l.bf16 %v2273_v18  ;;  %v1249_v1 = vunpack.c.h.bf16 %v2266_v15  ;;  %v1251_v45 = vunpack.c.h.bf16 %v2273_v18 }
 0x136   : > { %v1160_v42 = vpop.f32.mrf.mxu0  ;;  %v1822_v25 = vpop.eup %1821  ;;  %v1731_v24 = vpack.c.bf16 %v1341_v9, %v1340_v37  ;;  %v1732_v2 = vpack.c.bf16 %v1343_v56, %v1342_v41  ;;  %v1256_v27 = vunpack.c.l.bf16 %v2270_v17  ;;  %v1258_v8 = vunpack.c.l.bf16 %v2276_v19 }
 0x137   : > { %v1272_v5 = vadd.f32 %v1240_v12, %v1160_v42  ;;  %v1213_v11 = vpop.f32.mrf.mxu1  ;;  %v1824_v38 = vpop.eup %1823  ;;  %v731_v16 = vadd.f32 1.0, %v1822_v25  ;;  %v1257_v12 = vunpack.c.h.bf16 %v2270_v17  ;;  %v1259_v9 = vunpack.c.h.bf16 %v2276_v19 }
 0x138   : > { %v1274_v21 = vadd.f32 %v1242_v3, %v1213_v11  ;;  %v1162_v39 = vpop.f32.mrf.mxu0  ;;  %v733_v4 = vadd.f32 1.0, %v1824_v38  ;;  %1456 = vst [vmem:[%s2467_s8 + $0x60] sm:$0xff] %v1731_v24  ;;  %1457 = vst [vmem:[%s2467_s8 + $0x68] sm:$0xff] %v1732_v2  ;;  %v1826_v37 = vpop.eup %1825 }
 0x139   : > { %v1273_v48 = vadd.f32 %v1241_v40, %v1162_v39  ;;  %v1215_v46 = vpop.f32.mrf.mxu1  ;;  %1837 = vlog2.f32 %v731_v16  ;;  %v1328_v15 = vadd.f32 %v2452_v53, %v1272_v5  ;;  %v1828_v18 = vpop.eup %1827  ;;  %v732_v56 = vadd.f32 1.0, %v1826_v37 }
 0x13a   : > { %v1275_v41 = vadd.f32 %v1243_v49, %v1215_v46  ;;  %v1166_v3 = vpop.f32.mrf.mxu0  ;;  %1839 = vlog2.f32 %v733_v4  ;;  %v734_v24 = vadd.f32 1.0, %v1828_v18  ;;  %v1330_v2 = vadd.f32 %v2452_v53, %v1274_v21 }
 0x13b   : > { %v1329_v42 = vadd.f32 %v2452_v53, %v1273_v48  ;;  %v1280_v25 = vadd.f32 %v1248_v10, %v1166_v3  ;;  %v1219_v40 = vpop.f32.mrf.mxu1  ;;  %v687_v49 = vmax.f32 %v2401_v14, 0.0  ;;  %1841 = vlog2.f32 %v732_v56 }
 0x13c   : > { %v1331_v17 = vadd.f32 %v2452_v53, %v1275_v41  ;;  %v1282_v11 = vadd.f32 %v1250_v52, %v1219_v40  ;;  %v1168_v38 = vpop.f32.mrf.mxu0  ;;  %v689_v4 = vmax.f32 %v2403_v20, 0.0  ;;  %1843 = vlog2.f32 %v734_v24 }
 0x13d   : > { %v1725_v5 = vpack.c.bf16 %v1329_v42, %v1328_v15  ;;  %v1281_v19 = vadd.f32 %v1249_v1, %v1168_v38  ;;  %v1221_v16 = vpop.f32.mrf.mxu1  ;;  %v1336_v53 = vadd.f32 %v2461_v57, %v1280_v25  ;;  %v688_v40 = vmax.f32 %v2410_v26, 0.0 }
 0x13e   : > { %v1830_v39 = vpop.eup %1829  ;;  %v1726_v10 = vpack.c.bf16 %v1331_v17, %v1330_v2  ;;  %v1283_v48 = vadd.f32 %v1251_v45, %v1221_v16  ;;  %v1170_v46 = vpop.f32.mrf.mxu0  ;;  %v1338_v52 = vadd.f32 %v2461_v57, %v1282_v11  ;;  %v690_v11 = vmax.f32 %v2413_v30, 0.0 }
 0x13f   : > { %v1832_v21 = vpop.eup %1831  ;;  %v736_v37 = vmul.f32 0.6931472, %v1830_v39  ;;  %1450 = vst [vmem:[%s2467_s8 + $0x30] sm:$0xff] %v1725_v5  ;;  %v1337_v14 = vadd.f32 %v2461_v57, %v1281_v19  ;;  %v1223_v15 = vpop.f32.mrf.mxu1  ;;  %v1288_v20 = vadd.f32 %v1256_v27, %v1170_v46 }
 0x140   : > { %v1834_v1 = vpop.eup %1833  ;;  %v740_v41 = vmul.f32 0.6931472, %v1832_v21  ;;  %1451 = vst [vmem:[%s2467_s8 + $0x38] sm:$0xff] %v1726_v10  ;;  %v1339_v3 = vadd.f32 %v2461_v57, %v1283_v48  ;;  %v1290_v18 = vadd.f32 %v1258_v8, %v1223_v15  ;;  %v1172_v45 = vpop.f32.mrf.mxu0 }
 0x141   : > { %v1836_v56 = vpop.eup %1835  ;;  %v751_v42 = vadd.f32 %v736_v37, %v687_v49  ;;  %v738_v25 = vmul.f32 0.6931472, %v1834_v1  ;;  %v1729_v24 = vpack.c.bf16 %v1337_v14, %v1336_v53  ;;  %v1225_v2 = vpop.f32.mrf.mxu1  ;;  %v1289_v27 = vadd.f32 %v1257_v12, %v1172_v45 }
 0x142   : > { %v753_v17 = vadd.f32 %v740_v41, %v689_v4  ;;  %v742_v38 = vmul.f32 0.6931472, %v1836_v56  ;;  %v1730_v5 = vpack.c.bf16 %v1339_v3, %v1338_v52  ;;  %v1291_v8 = vadd.f32 %v1259_v9, %v1225_v2 }
 0x143   : > { %v2519_v19 = vadd.f32 -2.3, %v751_v42  ;;  %v752_v57 = vadd.f32 %v738_v25, %v688_v40  ;;  %1454 = vst [vmem:[%s2467_s8 + $0x50] sm:$0xff] %v1729_v24  ;;  %v1344_v26 = vadd.f32 %v2481_v13, %v1288_v20  ;;  %v1346_v39 = vadd.f32 %v2481_v13, %v1290_v18 }
 0x144   : > { %v2522_v16 = vadd.f32 -2.3, %v753_v17  ;;  %v754_v49 = vadd.f32 %v742_v38, %v690_v11  ;;  %1455 = vst [vmem:[%s2467_s8 + $0x58] sm:$0xff] %v1730_v5  ;;  %v1345_v30 = vadd.f32 %v2481_v13, %v1289_v27  ;;  %v1347_v48 = vadd.f32 %v2481_v13, %v1291_v8 }
 0x145   : > { %v767_v4 = vsub.f32 0.0, %v2519_v19  ;;  %v2528_v10 = vadd.f32 -2.3, %v752_v57  ;;  %v691_v41 = vmax.f32 %v2425_v59, 0.0  ;;  %v693_v20 = vmax.f32 %v2427_v60, 0.0 }
 0x146   : > { %v769_v46 = vsub.f32 0.0, %v2522_v16  ;;  %v2533_v12 = vadd.f32 -2.3, %v754_v49  ;;  %v1838_v9 = vpop.eup %1837  ;;  %v1733_v53 = vpack.c.bf16 %v1345_v30, %v1344_v26  ;;  %v1734_v52 = vpack.c.bf16 %v1347_v48, %v1346_v39 }
 0x147   : > { %v775_v21 = vmul.f32 1.442695, %v767_v4  ;;  %v768_v37 = vsub.f32 0.0, %v2528_v10  ;;  %v1840_v14 = vpop.eup %1839  ;;  %v744_v3 = vmul.f32 0.6931472, %v1838_v9  ;;  %v692_v24 = vmax.f32 %v2439_v28, 0.0 }
 0x148   : > { %v779_v15 = vmul.f32 1.442695, %v769_v46  ;;  %v770_v1 = vsub.f32 0.0, %v2533_v12  ;;  %v748_v18 = vmul.f32 0.6931472, %v1840_v14  ;;  %1458 = vst [vmem:[%s2467_s8 + $0x70] sm:$0xff] %v1733_v53  ;;  %v1842_v45 = vpop.eup %1841  ;;  %v542_v4 = vadd.f32 %v2393_v61, %v2407_v23 }
 0x149   : > { %1845 = vpow2.f32 %v775_v21  ;;  %v777_v13 = vmul.f32 1.442695, %v768_v37  ;;  %1459 = vst [vmem:[%s2467_s8 + $0x78] sm:$0xff] %v1734_v52  ;;  %v755_v42 = vadd.f32 %v744_v3, %v691_v41  ;;  %v1844_v40 = vpop.eup %1843  ;;  %v746_v2 = vmul.f32 0.6931472, %v1842_v45 }
 0x14a   : > { %1847 = vpow2.f32 %v779_v15  ;;  %v781_v56 = vmul.f32 1.442695, %v770_v1  ;;  %v757_v25 = vadd.f32 %v748_v18, %v693_v20  ;;  %v694_v17 = vmax.f32 %v2441_v29, 0.0 }
 0x14b   : > { %1849 = vpow2.f32 %v777_v13  ;;  %v2542_v59 = vadd.f32 -2.3, %v755_v42  ;;  %v750_v11 = vmul.f32 0.6931472, %v1844_v40  ;;  %v756_v38 = vadd.f32 %v746_v2, %v692_v24 }
 0x14c   : > { %1851 = vpow2.f32 %v781_v56  ;;  %v2545_v60 = vadd.f32 -2.3, %v757_v25  ;;  %v585_v48 = vadd.f32 %v2395_v62, %v2407_v23  ;;  %v544_v9 = vadd.f32 %v2397_v63, %v2407_v23 }
 0x14d   : > { %v771_v5 = vsub.f32 0.0, %v2542_v59  ;;  %v758_v57 = vadd.f32 %v750_v11, %v694_v17  ;;  %v2549_v8 = vadd.f32 -2.3, %v756_v38  ;;  %v587_v37 = vadd.f32 %v2399_v6, %v2407_v23 }
 0x14e   : > { %v773_v27 = vsub.f32 0.0, %v2545_v60  ;;  %v791_v52 = vsub.f32 %v2304_v33, %v542_v4  ;;  %v793_v15 = vsub.f32 %v2311_v35, %v585_v48  ;;  %v792_v62 = vsub.f32 %v2301_v32, %v544_v9 }
 0x14f   : > { %v783_v49 = vmul.f32 1.442695, %v771_v5  ;;  %v2551_v26 = vadd.f32 -2.3, %v758_v57  ;;  %v772_v39 = vsub.f32 0.0, %v2549_v8  ;;  %v794_v20 = vsub.f32 %v2308_v34, %v587_v37 }
 0x150   : > { %v787_v28 = vmul.f32 1.442695, %v773_v27  ;;  %v628_v34 = vadd.f32 %v2405_v22, %v2407_v23 }
 0x151   : > { %1853 = vpow2.f32 %v783_v49  ;;  %v774_v29 = vsub.f32 0.0, %v2551_v26  ;;  %v785_v30 = vmul.f32 1.442695, %v772_v39 }
 0x152   : > { %1855 = vpow2.f32 %v787_v28  ;;  %v795_v27 = vsub.f32 %v2348_v50, %v628_v34  ;;  %v630_v28 = vadd.f32 %v2418_v36, %v2407_v23  ;;  %v798_v36 = vsub.f32 %v2333_v44, %v2423_v47 }
 0x153   : > { %v789_v46 = vmul.f32 1.442695, %v774_v29  ;;  %1857 = vpow2.f32 %v785_v30  ;;  %v797_v30 = vsub.f32 %v2352_v51, %v2416_v31 }
 0x154   : > { %v796_v23 = vsub.f32 %v2330_v43, %v630_v28 }
 0x155   : > { %1859 = vpow2.f32 %v789_v46 }
 0x156   : > { %v1846_v21 = vpop.eup %1845 }
 0x157   : > { %v1848_v53 = vpop.eup %1847  ;;  %v799_v14 = vmul.f32 0.70710677, %v1846_v21  ;;  %v815_v63 = vmul.f32 0.35355338, %v1846_v21 }
 0x158   : > { %v1850_v61 = vpop.eup %1849  ;;  %v801_v1 = vmul.f32 0.70710677, %v1848_v53  ;;  %v817_v6 = vmul.f32 0.35355338, %v1848_v53 }
 0x159   : > { %v1852_v41 = vpop.eup %1851  ;;  %v2566_v3 = vmul.f32 %v799_v14, %v791_v52  ;;  %v800_v13 = vmul.f32 0.70710677, %v1850_v61  ;;  %v816_v35 = vmul.f32 0.35355338, %v1850_v61 }
 0x15a   : > { %v2569_v18 = vmul.f32 %v801_v1, %v793_v15  ;;  %v802_v45 = vmul.f32 0.70710677, %v1852_v41  ;;  %v818_v2 = vmul.f32 0.35355338, %v1852_v41 }
 0x15b   : > { %v823_v33 = vadd.f32 %v815_v63, %v2566_v3  ;;  %v839_v56 = vsub.f32 %v2566_v3, %v815_v63  ;;  %v2573_v42 = vmul.f32 %v800_v13, %v792_v62  ;;  %v871_v28 = vmul.f32 %v2566_v3, %v2566_v3 }
 0x15c   : > { %v825_v40 = vadd.f32 %v817_v6, %v2569_v18  ;;  %v841_v32 = vsub.f32 %v2569_v18, %v817_v6  ;;  %v2577_v25 = vmul.f32 %v802_v45, %v794_v20 }
 0x15d   : > { %1861 = verf.f32 %v823_v33  ;;  %v824_v24 = vadd.f32 %v816_v35, %v2573_v42  ;;  %v840_v17 = vsub.f32 %v2573_v42, %v816_v35 }
 0x15e   : > { %1863 = verf.f32 %v839_v56  ;;  %v1854_v11 = vpop.eup %1853  ;;  %v826_v38 = vadd.f32 %v818_v2, %v2577_v25  ;;  %v842_v57 = vsub.f32 %v2577_v25, %v818_v2 }
 0x15f   : > { %1865 = verf.f32 %v825_v40  ;;  %v1856_v5 = vpop.eup %1855  ;;  %v803_v49 = vmul.f32 0.70710677, %v1854_v11  ;;  %v819_v29 = vmul.f32 0.35355338, %v1854_v11 }
 0x160   : > { %1867 = verf.f32 %v841_v32  ;;  %v1858_v22 = vpop.eup %1857  ;;  %v805_v48 = vmul.f32 0.70710677, %v1856_v5  ;;  %v821_v21 = vmul.f32 0.35355338, %v1856_v5 }
 0x161   : > { %1869 = verf.f32 %v824_v24  ;;  %v2588_v39 = vmul.f32 %v803_v49, %v795_v27  ;;  %v804_v37 = vmul.f32 0.70710677, %v1858_v22  ;;  %v820_v14 = vmul.f32 0.35355338, %v1858_v22 }
 0x162   : > { %1871 = verf.f32 %v840_v17  ;;  %v1860_v4 = vpop.eup %1859  ;;  %v2594_v9 = vmul.f32 %v805_v48, %v797_v30 }
 0x163   : > { %1873 = verf.f32 %v826_v38  ;;  %v827_v46 = vadd.f32 %v819_v29, %v2588_v39  ;;  %v843_v50 = vsub.f32 %v2588_v39, %v819_v29  ;;  %v806_v53 = vmul.f32 0.70710677, %v1860_v4 }
 0x164   : > { %1875 = verf.f32 %v842_v57  ;;  %v829_v51 = vadd.f32 %v821_v21, %v2594_v9  ;;  %v845_v31 = vsub.f32 %v2594_v9, %v821_v21  ;;  %v2601_v52 = vmul.f32 %v804_v37, %v796_v23 }
 0x165   : > { %1877 = verf.f32 %v827_v46  ;;  %v2603_v61 = vmul.f32 %v806_v53, %v798_v36  ;;  %v822_v15 = vmul.f32 0.35355338, %v1860_v4  ;;  %v873_v29 = vmul.f32 %v2569_v18, %v2569_v18 }
 0x166   : > { %1879 = verf.f32 %v843_v50  ;;  %v828_v43 = vadd.f32 %v820_v14, %v2601_v52  ;;  %v844_v44 = vsub.f32 %v2601_v52, %v820_v14  ;;  %v872_v46 = vmul.f32 %v2573_v42, %v2573_v42 }
 0x167   : > { %1881 = verf.f32 %v829_v51  ;;  %v830_v41 = vadd.f32 %v822_v15, %v2603_v61  ;;  %v846_v62 = vsub.f32 %v2603_v61, %v822_v15  ;;  %v874_v37 = vmul.f32 %v2577_v25, %v2577_v25 }
 0x168   : > { %1883 = verf.f32 %v845_v31  ;;  %v879_v36 = vsub.f32 0.0, %v871_v28  ;;  %v881_v18 = vsub.f32 0.0, %v873_v29  ;;  %v880_v15 = vsub.f32 0.0, %v872_v46 }
 0x169   : > { %1885 = verf.f32 %v828_v43  ;;  %v875_v42 = vmul.f32 %v2588_v39, %v2588_v39  ;;  %v882_v43 = vsub.f32 0.0, %v874_v37 }
 0x16a   : > { %v1862_v1 = vpop.eup %1861  ;;  %1887 = verf.f32 %v844_v44 }
 0x16b   : > { %v1864_v47 = vpop.eup %1863  ;;  %1889 = verf.f32 %v830_v41  ;;  %v889_v41 = vsub.f32 %v881_v18, %v2522_v16  ;;  %v883_v39 = vsub.f32 0.0, %v875_v42  ;;  %v877_v16 = vmul.f32 %v2594_v9, %v2594_v9 }
 0x16c   : > { %v1866_v63 = vpop.eup %1865  ;;  %v855_v13 = vsub.f32 %v1862_v1, %v1864_v47  ;;  %1891 = verf.f32 %v846_v62  ;;  %v887_v47 = vsub.f32 %v879_v36, %v2519_v19  ;;  %v878_v9 = vmul.f32 %v2603_v61, %v2603_v61 }
 0x16d   : > { %v1868_v20 = vpop.eup %1867  ;;  %v1676_v19 = vadd.f32 -0.9189385, %v889_v41 }
 0x16e   : > { %v1870_v6 = vpop.eup %1869  ;;  %v2609_v45 = vmul.f32 0.5, %v855_v13  ;;  %v857_v33 = vsub.f32 %v1866_v63, %v1868_v20 }
 0x16f   : > { %v1872_v56 = vpop.eup %1871 }
 0x170   : > { %v1874_v35 = vpop.eup %1873  ;;  %v911_v40 = vmax.f32 %v2609_v45, 1e-06  ;;  %v856_v32 = vsub.f32 %v1870_v6, %v1872_v56  ;;  %v2612_v34 = vmul.f32 0.5, %v857_v33  ;;  %v888_v6 = vsub.f32 %v880_v15, %v2528_v10 }
 0x171   : > { %v1876_v24 = vpop.eup %1875  ;;  %v890_v33 = vsub.f32 %v882_v43, %v2533_v12  ;;  %vm903_vm3 = vcmp.gt.f32.partialorder %v2609_v45, 1e-06 }
 0x172   : > { %1893 = vlog2.f32 %v911_v40  ;;  %v2614_v2 = vmul.f32 0.5, %v856_v32  ;;  %v858_v17 = vsub.f32 %v1874_v35, %v1876_v24  ;;  %v1878_v11 = vpop.eup %1877  ;;  %v913_v38 = vmax.f32 %v2612_v34, 1e-06 }
 0x173   : > { %v1880_v5 = vpop.eup %1879  ;;  %v1674_v40 = vadd.f32 -0.9189385, %v887_v47  ;;  %v876_v24 = vmul.f32 %v2601_v52, %v2601_v52  ;;  %vm905_vm5 = vcmp.gt.f32.partialorder %v2612_v34, 1e-06 }
 0x174   : > { %v912_v57 = vmax.f32 %v2614_v2, 1e-06  ;;  %v2618_v27 = vmul.f32 0.5, %v858_v17  ;;  %v859_v49 = vsub.f32 %v1878_v11, %v1880_v5  ;;  %1895 = vlog2.f32 %v913_v38  ;;  %v1882_v22 = vpop.eup %1881 }
 0x175   : > { %v1884_v30 = vpop.eup %1883  ;;  %v1675_v11 = vadd.f32 -0.9189385, %v888_v6  ;;  %v891_v38 = vsub.f32 %v883_v39, %v2542_v59  ;;  %vm904_vm4 = vcmp.gt.f32.partialorder %v2614_v2, 1e-06 }
 0x176   : > { %1897 = vlog2.f32 %v912_v57  ;;  %v914_v4 = vmax.f32 %v2618_v27, 1e-06  ;;  %v2625_v48 = vmul.f32 0.5, %v859_v49  ;;  %v861_v50 = vsub.f32 %v1882_v22, %v1884_v30  ;;  %v1886_v21 = vpop.eup %1885 }
 0x177   : > { %v1888_v23 = vpop.eup %1887  ;;  %v1677_v57 = vadd.f32 -0.9189385, %v890_v33  ;;  %v885_v49 = vsub.f32 0.0, %v877_v16  ;;  %vm906_vm6 = vcmp.gt.f32.partialorder %v2618_v27, 1e-06  ;;  %v1911_v16 = vld [vmem:[%s2217_s16 + $0x10] sm:$0xff] }
 0x178   : > { %1899 = vlog2.f32 %v914_v4  ;;  %v915_v3 = vmax.f32 %v2625_v48, 1e-06  ;;  %v2632_v53 = vmul.f32 0.5, %v861_v50  ;;  %v1890_v51 = vpop.eup %1889  ;;  %v860_v31 = vsub.f32 %v1886_v21, %v1888_v23 }
 0x179   : > { %v1892_v14 = vpop.eup %1891  ;;  %v884_v4 = vsub.f32 0.0, %v876_v24  ;;  %v1678_v59 = vadd.f32 -0.9189385, %v891_v38  ;;  %v886_v50 = vsub.f32 0.0, %v878_v9  ;;  %v893_v61 = vsub.f32 %v885_v49, %v2545_v60  ;;  %v1912_v24 = vld [vmem:[%s2217_s16 + $0x18] sm:$0xff]  ;;  %v2771_v9 = vld [vmem:[#allocation16_spill] sm:$0xff] }
 0x17a   : > { %1901 = vlog2.f32 %v915_v3  ;;  %v917_v1 = vmax.f32 %v2632_v53, 1e-06  ;;  %v862_v44 = vsub.f32 %v1890_v51, %v1892_v14  ;;  %v2637_v25 = vmul.f32 0.5, %v860_v31  ;;  %v2772_v49 = vld [vmem:[#allocation17_spill] sm:$0xff] }
 0x17b   : > { %vm907_vm7 = vcmp.gt.f32.partialorder %v2625_v48, 1e-06  ;;  %v892_v3 = vsub.f32 %v884_v4, %v2549_v8  ;;  %v894_v27 = vsub.f32 %v886_v50, %v2551_v26  ;;  %v1680_v42 = vadd.f32 -0.9189385, %v893_v61 }
 0x17c   : > { %1903 = vlog2.f32 %v917_v1  ;;  %v2641_v63 = vmul.f32 0.5, %v862_v44  ;;  %v916_v13 = vmax.f32 %v2637_v25, 1e-06  ;;  %vm908_vm8 = vcmp.gt.f32.partialorder %v2637_v25, 1e-06 }
 0x17d   : > { %v1679_v1 = vadd.f32 -0.9189385, %v892_v3  ;;  %vm909_vm9 = vcmp.gt.f32.partialorder %v2632_v53, 1e-06  ;;  %v1681_v60 = vadd.f32 -0.9189385, %v894_v27 }
 0x17e   : > { %v918_v56 = vmax.f32 %v2641_v63, 1e-06  ;;  %1905 = vlog2.f32 %v916_v13  ;;  %vm910_vm10 = vcmp.gt.f32.partialorder %v2641_v63, 1e-06  ;;  %v1292_v53 = vld [vmem:[%s2749_s5] sm:$0xff] }
 0x17f   : > { %v1894_v62 = vpop.eup %1893  ;;  %v1909_v63 = vld [vmem:[%s2217_s16] sm:$0xff] }
 0x180   : > { %v920_v20 = vmul.f32 0.6931472, %v1894_v62  ;;  %1907 = vlog2.f32 %v918_v56  ;;  %v1228_v33 = vunpack.c.l.bf16 %v1909_v63  ;;  %v1910_v56 = vld [vmem:[%s2217_s16 + $0x8] sm:$0xff]  ;;  %s1735_s16 = sshll.u32 %s2045_s27, 11 }
 0x181   : > { %v1896_v35 = vpop.eup %1895  ;;  %s2690_s27 = scalar_lea.hbm %s2750_s6, %s1735_s16 }
 0x182   : > { %v924_v17 = vmul.f32 0.6931472, %v1896_v35  ;;  %v935_v10 = vsel %vm903_vm3, %v920_v20, %v1674_v40  ;;  %v1230_v35 = vunpack.c.l.bf16 %v1910_v56  ;;  %v1229_v40 = vunpack.c.h.bf16 %v1909_v63 }
 0x183   : > { %v1898_v32 = vpop.eup %1897  ;;  %v943_v28 = vsub.f32 0.0, %v935_v10  ;;  %v1233_v10 = vunpack.c.h.bf16 %v1911_v16  ;;  %v1260_v38 = vadd.f32 %v1228_v33, %v2429_v7 }
 0x184   : > { %v922_v12 = vmul.f32 0.6931472, %v1898_v32  ;;  %v937_v52 = vsel %vm905_vm5, %v924_v17, %v1676_v19  ;;  %v1231_v19 = vunpack.c.h.bf16 %v1910_v56  ;;  %v1232_v32 = vunpack.c.l.bf16 %v1911_v16 }
 0x185   : > { %v1900_v5 = vpop.eup %1899  ;;  %v945_v21 = vsub.f32 0.0, %v937_v52  ;;  %v1234_v17 = vunpack.c.l.bf16 %v1912_v24 }
 0x186   : > { %v936_v45 = vsel %vm904_vm4, %v922_v12, %v1675_v11  ;;  %v926_v22 = vmul.f32 0.6931472, %v1900_v5  ;;  %v1235_v11 = vunpack.c.h.bf16 %v1912_v24  ;;  %v2770_v5 = vld [vmem:[#allocation15_spill] sm:$0xff]  ;;  %v1264_v52 = vadd.f32 %v1232_v32, %v2475_v54 }
 0x187   : > { %v944_v29 = vsub.f32 0.0, %v936_v45  ;;  %v1902_v30 = vpop.eup %1901  ;;  %v1261_v45 = vadd.f32 %v1229_v40, %v2771_v9 }
 0x188   : > { %v938_v46 = vsel %vm906_vm6, %v926_v22, %v1677_v57  ;;  %v928_v2 = vmul.f32 0.6931472, %v1902_v30  ;;  %v1262_v57 = vadd.f32 %v1230_v35, %v2770_v5  ;;  %v1263_v22 = vadd.f32 %v1231_v19, %v2772_v49 }
 0x189   : > { %v951_v37 = vadd.f32 %v944_v29, %v943_v28  ;;  %v1904_v34 = vpop.eup %1903  ;;  %v946_v36 = vsub.f32 0.0, %v938_v46  ;;  %v1266_v28 = vadd.f32 %v1234_v17, %v2478_v55  ;;  %v1265_v29 = vadd.f32 %v1233_v10, %v2484_v58 }
 0x18a   : > { %v939_v23 = vsel %vm907_vm7, %v928_v2, %v1678_v59  ;;  %v932_v31 = vmul.f32 0.6931472, %v1904_v34  ;;  %v1267_v4 = vadd.f32 %v1235_v11, %v2492_v0 }
 0x18b   : > { %v952_v18 = vadd.f32 %v951_v37, %v945_v21  ;;  %v947_v51 = vsub.f32 0.0, %v939_v23  ;;  %v1906_v15 = vpop.eup %1905 }
 0x18c   : > { %v930_v43 = vmul.f32 0.6931472, %v1906_v15  ;;  %v941_v41 = vsel %vm909_vm9, %v932_v31, %v1680_v42 }
 0x18d   : > { %v953_v14 = vadd.f32 %v952_v18, %v946_v36  ;;  %v1908_v47 = vpop.eup %1907  ;;  %v949_v13 = vsub.f32 0.0, %v941_v41 }
 0x18e   : > { %v934_v8 = vmul.f32 0.6931472, %v1908_v47  ;;  %v940_v48 = vsel %vm908_vm8, %v930_v43, %v1679_v1 }
 0x18f   : > { %v954_v44 = vadd.f32 %v953_v14, %v947_v51  ;;  %v948_v26 = vsub.f32 0.0, %v940_v48 }
 0x190   : > { %v942_v62 = vsel %vm910_vm10, %v934_v8, %v1681_v60 }
 0x191   : > { %v955_v20 = vadd.f32 %v954_v44, %v948_v26  ;;  %v950_v6 = vsub.f32 0.0, %v942_v62 }
 0x193   : > { %v956_v39 = vadd.f32 %v955_v20, %v949_v13 }
 0x195   : > { %v957_v25 = vadd.f32 %v956_v39, %v950_v6 }
 0x197   : > { %958 = vadd.xlane.f32.xlu1 %v957_v25 }
 0x1a8   : > { %1298 = vperm.xlu1 %1809, %v1292_v53  }
 0x220   : > { %v959_v12 = vpop.xlane.xlu1 %958 }
 0x221   : > { %961 = vst.msk [vmem:[%s378_s11] sm:$0xff] %vm960_vm11, %v959_v12 }
 0x224   : > { %v1299_v30 = vpop.permute.xlu1 %1298 }
 0x225   : > { %v1316_v7 = vadd.f32 %v1299_v30, %v1260_v38  ;;  %v1317_v59 = vadd.f32 %v1299_v30, %v1261_v45  ;;  %v1318_v46 = vadd.f32 %v1299_v30, %v1262_v57  ;;  %v1319_v50 = vadd.f32 %v1299_v30, %v1263_v22 }
 0x226   : > { %v1320_v2 = vadd.f32 %v1299_v30, %v1264_v52  ;;  %v1321_v54 = vadd.f32 %v1299_v30, %v1265_v29  ;;  %v1322_v55 = vadd.f32 %v1299_v30, %v1266_v28  ;;  %v1323_v21 = vadd.f32 %v1299_v30, %v1267_v4 }
 0x227   : > { %v1719_v58 = vpack.c.bf16 %v1317_v59, %v1316_v7  ;;  %v1720_v37 = vpack.c.bf16 %v1319_v50, %v1318_v46 }
 0x228   : > { %v1721_v0 = vpack.c.bf16 %v1321_v54, %v1320_v2  ;;  %v1722_v61 = vpack.c.bf16 %v1323_v21, %v1322_v55 }
 0x229   : > { %1444 = vst [vmem:[%s2467_s8] sm:$0xff] %v1719_v58  ;;  %1445 = vst [vmem:[%s2467_s8 + $0x8] sm:$0xff] %v1720_v37 }
 0x22a   : > { %1446 = vst [vmem:[%s2467_s8 + $0x10] sm:$0xff] %v1721_v0  ;;  %1447 = vst [vmem:[%s2467_s8 + $0x18] sm:$0xff] %v1722_v61 }
 0x22b   : > { %1982 = shalt.err (!%p1979_p1)
}
 0x22c   : > { %s1983_s8 = scalar_lea.hbm %s2690_s27, 2048  ;;  %s1987_s23 = scalar_lea.hbm %s2750_s6, 4096 }
 0x22d   : > { %p1984_p10 = scmp.ne.s32.totalorder %s2690_s27, %s1983_s8  ;;  %p1988_p8 = scmp.lt.s32.totalorder %s2690_s27, %s2750_s6 }
 0x22e   : > { %p1989_p0 = scmp.lt.s32.totalorder %s1987_s23, %s1983_s8 }
 0x22f   : > { %p1985_p13 = pnand %p1984_p10, %p2154_p9 }
 0x230   : > { %p1990_p2 = por %p1989_p0, %p1988_p8 }
 0x231   : > { %p1986_p3 = pneg %p1985_p13 }
 0x233   : > { %p1991_p5 = pnand %p1990_p2, %p1986_p3 }
 0x235   : > { %1994 = shalt.err (!%p1991_p5)
}
 0x236   : > { %s2061_s19 = smov 512   ;;  %s2062_s11 = smov 32  }
 0x237   : > { %1740 = dma.vmem_to_hbm [thread:$0]  (%p2154_p9), %s2692_s22, 2048, %s2690_s27, %s1461_s20, %s2061_s19, %s2061_s19, %s2062_s11  }
 0x238 PF: > { %s1501_s30 = sand.u32 1, %s2033_s24   ;;  %p1750_p6 = pnand %p1633_p12, %p2161_p11 }
 0x239   : > { %s1502_s10 = scalar_lea.sflag [#allocation4], %s1501_s30 }
 0x23a   : > { %p1751_p4 = pneg %p1750_p6 }
 0x23c   : > { %2028 = dma.done.wait (%p1751_p4), %s1502_s10, 2048  }
 0x23d   : > { %2030 = vsyncadd (%p1751_p4), %s1502_s10, 4294965248  ;;  %s27_s29 = sadd.s32 1, %s2053_s29   ;;  %s2774_s0 = sld [smem:[#allocation11_spill]] }
 0x23e   : > { %p24_p7 = scmp.ge.s32.totalorder %s27_s29, 4   ;;  %s2775_s26 = sld [smem:[#allocation13_spill]] }
 0x23f   : > { %s2776_s14 = sld [smem:[#allocation12_spill]]  ;;  %s2777_s24 = smov %s2037_s25 }
 0x240   : > { %s2779_s27 = smov %s2049_s28 }
 0x241   :  { %26 = sbr.rel (!%p24_p7) target bundleno = 10 (0xa), region = 114 }
 0x243   : > { %s2778_s25 = smov %s2774_s0 }
 0x245   : > { %s2780_s28 = smov %s2776_s14 }
 0x246   :  { %1517 = vsyncpa [#allocation3], 1 }
 0x247   :  { %1519 = vsyncpa [#allocation3 + $0x1], 1 }
 0x248   :  { %1520 = vsyncpa [#allocation6], 1 }
 0x249   :  { %1522 = vsyncpa [#allocation6 + $0x1], 1 }
 0x24a   :  { %1523 = vsyncpa [#allocation4], 1 }
 0x24b   :  { %1525 = vsyncpa [#allocation4 + $0x1], 1 }

</bundles_post_ra>
